<compile_context>
chip_gen: v5e
topology: v5e:2x2
jax: 0.10.0
libtpu: 0.0.40
codegen_flags: <defaults>
</compile_context>

<pallas_src>
import functools

import jax
import jax.numpy as jnp
from jax import lax
from jax.experimental import pallas as pl
from jax.experimental.pallas import tpu as pltpu


def _frelu_kernel(x_ref, wb_ref, m_ref, o_ref, *, W):
    """One (BR, HWp) block per grid step.

    x_ref  : (BR, HWp) input rows (row = one (image, channel) pair; spatial
             flattened on the lane axis, padded to a multiple of 128)
    wb_ref : (BR, 10)  per-row params: 9 depthwise taps (BN scale folded in,
             row-major over (kh, kw)) followed by the folded BN bias
    m_ref  : (4, HWp)  {0,1} boundary masks [w>=1, w<=W-2, h>=1, h<=H-2]
             (zero on lane-pad positions)
    o_ref  : (BR, HWp) output rows
    """
    BR, HWp = x_ref.shape
    x = x_ref[...].astype(jnp.float32)
    wb = wb_ref[...].astype(jnp.float32)

    m_lf = m_ref[0:1, :]          # (1, HWp), sublane-broadcast on use
    m_rt = m_ref[1:2, :]
    m_up = m_ref[2:3, :]
    m_dn = m_ref[3:4, :]

    # Horizontal neighbours: one +-1 lane roll each, column-masked once.
    xl = pltpu.roll(x, 1, axis=1) * m_lf          # xl[p] = x[p-1]
    xr = pltpu.roll(x, HWp - 1, axis=1) * m_rt    # xr[p] = x[p+1]

    # Per-kernel-row horizontal partial sums (tap k = (dh+1)*3 + (dw+1)).
    s_m1 = wb[:, 0:1] * xl + wb[:, 1:2] * x + wb[:, 2:3] * xr   # dh = -1
    s_0  = wb[:, 3:4] * xl + wb[:, 4:5] * x + wb[:, 5:6] * xr   # dh =  0
    s_p1 = wb[:, 6:7] * xl + wb[:, 7:8] * x + wb[:, 8:9] * xr   # dh = +1

    # Vertical combine: two +-W lane rolls of the partial sums, row-masked.
    # All rolls are along the lane axis only, so every (image, channel) row is
    # independent; garbage read in an out-of-bounds tail block stays row-local
    # and its (masked) output writes are dropped by Pallas.
    acc = wb[:, 9:10] + s_0
    acc = acc + pltpu.roll(s_m1, W, axis=1) * m_up          # += s_m1[p - W]
    acc = acc + pltpu.roll(s_p1, HWp - W, axis=1) * m_dn    # += s_p1[p + W]

    o_ref[...] = jnp.maximum(x, acc).astype(o_ref.dtype)


def _pick_tiling(n_rows, hwp, itemsize):
    """Row tile + scoped-VMEM limit, sized per TPU generation.

    v5e/v6e (128 MiB VMEM): big ~6 MiB blocks, 64 MiB scoped limit (kernel is
    HBM-bound streaming; long DMA bursts are the lever).
    v7x (64 MiB VMEM, 2 TCs): 2 MiB blocks, 32 MiB limit, and keep >= 2 grid
    steps when possible so the "parallel" axis can shard across TensorCores.
    """
    mult = {4: 8, 2: 16, 1: 32}.get(itemsize, 8)   # sublane packing multiple
    try:
        phys_vmem = pltpu.get_tpu_info().vmem_capacity_bytes
    except Exception:
        phys_vmem = 128 * 1024 * 1024
    small_vmem = phys_vmem <= 64 * 1024 * 1024      # v7x-class
    max_block_bytes = (2 if small_vmem else 6) * 1024 * 1024
    vmem_limit = (32 if small_vmem else 64) * 1024 * 1024

    row_bytes = max(hwp * itemsize, 1)
    br = max(mult, (max_block_bytes // row_bytes) // mult * mult)
    # Prefer >= 2 grid steps (megacore sharding); tiny problems stay 1 block.
    if n_rows >= 2 * mult:
        half = max(mult, (((n_rows + 1) // 2 + mult - 1) // mult) * mult)
        br = min(br, half)
    br = min(br, n_rows)
    if br != n_rows and br % mult != 0:
        br = min(n_rows, max(mult, (br // mult) * mult))
    return br, vmem_limit


def _frelu_flat(x2, wb_rows, masks, W):
    """x2: (N*C, HWp); wb_rows: (N*C, 10); masks: (4, HWp)."""
    n_rows, HWp = x2.shape
    BR, vmem_limit = _pick_tiling(n_rows, HWp, x2.dtype.itemsize)
    grid = (pl.cdiv(n_rows, BR),)

    kernel = functools.partial(_frelu_kernel, W=W)

    elems = n_rows * HWp
    cost = pl.CostEstimate(
        flops=20 * elems,                            # 9 MACs + bias + masks + max
        transcendentals=0,
        bytes_accessed=2 * elems * x2.dtype.itemsize
        + (wb_rows.size + masks.size) * 4,
    )

    return pl.pallas_call(
        kernel,
        out_shape=jax.ShapeDtypeStruct((n_rows, HWp), x2.dtype),
        grid_spec=pltpu.PrefetchScalarGridSpec(
            num_scalar_prefetch=0,
            grid=grid,
            in_specs=[
                pl.BlockSpec((BR, HWp), lambda r: (r, 0)),
                pl.BlockSpec((BR, 10), lambda r: (r, 0)),   # taps + bias, one DMA
                pl.BlockSpec((4, HWp), lambda r: (0, 0)),   # masks, fetched once
            ],
            out_specs=pl.BlockSpec((BR, HWp), lambda r: (r, 0)),
        ),
        compiler_params=pltpu.CompilerParams(
            dimension_semantics=("parallel",),
            vmem_limit_bytes=vmem_limit,
        ),
        cost_estimate=cost,
    )(x2, wb_rows, masks)


def frelu_nchw(x_nchw, conv_w_c11kk, gamma, beta, run_mean, run_var, eps=1e-5):
    """PyTorch-facing wrapper (eval-mode BN fold), NCHW in / NCHW out.

    x_nchw       : (N, C, H, W)
    conv_w_c11kk : (C, 1, 3, 3) depthwise Conv2d weight (groups=C, bias=False)
    gamma, beta, run_mean, run_var : (C,) BatchNorm2d parameters (eval mode)
    """
    N, C, H, W = x_nchw.shape
    HW = H * W
    HWp = ((HW + 127) // 128) * 128     # keep the lane axis dense / unmasked

    scale = (gamma / jnp.sqrt(run_var + eps)).astype(jnp.float32)      # (C,)
    bias = (beta - run_mean * scale).astype(jnp.float32)               # (C,)

    # Fold BN scale into the 3x3 taps; bias becomes the 10th column.
    w9 = (conv_w_c11kk[:, 0, :, :].reshape(C, 9) * scale[:, None]).astype(jnp.float32)
    wb = jnp.concatenate([w9, bias[:, None]], axis=1)                  # (C, 10)
    wb_rows = jnp.tile(wb, (N, 1))                                     # (N*C, 10)

    # Host-precomputed {0,1} boundary masks on the (padded) flat lane axis.
    pos = jnp.arange(HWp, dtype=jnp.int32)
    valid = pos < HW
    h_pos = pos // W
    w_pos = pos % W
    masks = jnp.stack([
        (w_pos >= 1) & valid,
        (w_pos <= W - 2) & valid,
        (h_pos >= 1) & valid,
        (h_pos <= H - 2) & valid,
    ]).astype(jnp.float32)                                             # (4, HWp)

    # Free reshape of the contiguous NCHW layout.
    x2 = x_nchw.reshape(N * C, HW)
    if HWp != HW:
        # TODO(synk): ragged H*W costs one pad copy in / one crop copy out.
        x2 = jnp.pad(x2, ((0, 0), (0, HWp - HW)))

    out2 = _frelu_flat(x2, wb_rows, masks, W)
    return out2[:, :HW].reshape(N, C, H, W)


def _reference_nchw(x_nchw, conv_w, gamma, beta, run_mean, run_var, eps=1e-5):
    """Pure-JAX reference of FReLU.forward (eval-mode BN) for validation."""
    N, C, H, W = x_nchw.shape
    y = lax.conv_general_dilated(
        x_nchw, conv_w,
        window_strides=(1, 1), padding=((1, 1), (1, 1)),
        dimension_numbers=("NCHW", "OIHW", "NCHW"),
        feature_group_count=C)
    scale = (gamma / jnp.sqrt(run_var + eps)).reshape(1, C, 1, 1)
    bias = (beta - run_mean * gamma / jnp.sqrt(run_var + eps)).reshape(1, C, 1, 1)
    return jnp.maximum(x_nchw, y * scale + bias)


if __name__ == "__main__":
    key = jax.random.PRNGKey(0)

    def run_case(case_key, N, C, H, W):
        ks = jax.random.split(case_key, 6)
        x = jax.random.normal(ks[0], (N, C, H, W), dtype=jnp.float32)
        conv_w = jax.random.normal(ks[1], (C, 1, 3, 3), dtype=jnp.float32) * 0.2
        gamma = 1.0 + 0.1 * jax.random.normal(ks[2], (C,), dtype=jnp.float32)
        beta = 0.1 * jax.random.normal(ks[3], (C,), dtype=jnp.float32)
        run_mean = 0.1 * jax.random.normal(ks[4], (C,), dtype=jnp.float32)
        run_var = 1.0 + 0.1 * jax.random.uniform(ks[5], (C,), dtype=jnp.float32)

        out = frelu_nchw(x, conv_w, gamma, beta, run_mean, run_var)
        out = jax.block_until_ready(out)
        ref = _reference_nchw(x, conv_w, gamma, beta, run_mean, run_var)
        assert out.shape == (N, C, H, W)
        assert jnp.allclose(out, ref, atol=1e-5, rtol=1e-5), \
            f"mismatch vs reference at shape {(N, C, H, W)}"

    k1, k2, k3 = jax.random.split(key, 3)
    run_case(k1, 2, 4, 16, 16)   # main shape: HW multiple of 128, single block
    run_case(k2, 2, 3, 7, 7)     # ragged HW -> lane-pad path (HW=49 -> 128)
    run_case(k3, 4, 8, 16, 16)   # multi-step grid (megacore-shardable)

    print("KERNEL_OK")
</pallas_src>

<mosaic_0001>
module attributes {stable_mosaic.version = 11 : i64} {
  func.func @_frelu_kernel(%arg0: i32, %arg1: memref<8x256xf32, #tpu.memory_space<vmem>>, %arg2: memref<8x10xf32, #tpu.memory_space<vmem>>, %arg3: memref<4x256xf32, #tpu.memory_space<vmem>>, %arg4: memref<8x256xf32, #tpu.memory_space<vmem>>) attributes {dimension_semantics = [#tpu.dimension_semantics<parallel>], iteration_bounds = array<i64: 1>, scalar_prefetch = 0 : i64, scratch_operands = 0 : i64, tpu.core_type = #tpu.core_type<tc>, window_params = [{transform_indices = @transform_0, window_bounds = array<i64: 8, 256>}, {transform_indices = @transform_1, window_bounds = array<i64: 8, 10>}, {pipeline_mode = #tpu.pipeline_mode<synchronous>, transform_indices = @transform_2, window_bounds = array<i64: 4, 256>}, {transform_indices = @transform_3, window_bounds = array<i64: 8, 256>}]} {
    %c0 = arith.constant 0 : index
    %c0_0 = arith.constant 0 : index
    %0 = vector.load %arg1[%c0, %c0_0] : memref<8x256xf32, #tpu.memory_space<vmem>>, vector<8x256xf32>
    %c0_1 = arith.constant 0 : index
    %c0_2 = arith.constant 0 : index
    %1 = vector.load %arg2[%c0_1, %c0_2] : memref<8x10xf32, #tpu.memory_space<vmem>>, vector<8x10xf32>
    %c0_3 = arith.constant 0 : index
    %c0_4 = arith.constant 0 : index
    %2 = vector.load %arg3[%c0_3, %c0_4] : memref<4x256xf32, #tpu.memory_space<vmem>>, vector<1x256xf32>
    %c1 = arith.constant 1 : index
    %c0_5 = arith.constant 0 : index
    %3 = vector.load %arg3[%c1, %c0_5] : memref<4x256xf32, #tpu.memory_space<vmem>>, vector<1x256xf32>
    %c2 = arith.constant 2 : index
    %c0_6 = arith.constant 0 : index
    %4 = vector.load %arg3[%c2, %c0_6] : memref<4x256xf32, #tpu.memory_space<vmem>>, vector<1x256xf32>
    %c3 = arith.constant 3 : index
    %c0_7 = arith.constant 0 : index
    %5 = vector.load %arg3[%c3, %c0_7] : memref<4x256xf32, #tpu.memory_space<vmem>>, vector<1x256xf32>
    %c1_i32 = arith.constant 1 : i32
    %6 = tpu.dynamic_rotate %0 by %c1_i32 dim 1 : vector<8x256xf32>, i32 -> vector<8x256xf32>
    %7 = vector.broadcast %2 : vector<1x256xf32> to vector<8x256xf32>
    %8 = arith.mulf %6, %7 : vector<8x256xf32>
    %c255_i32 = arith.constant 255 : i32
    %9 = tpu.dynamic_rotate %0 by %c255_i32 dim 1 : vector<8x256xf32>, i32 -> vector<8x256xf32>
    %10 = vector.broadcast %3 : vector<1x256xf32> to vector<8x256xf32>
    %11 = arith.mulf %9, %10 : vector<8x256xf32>
    %12 = vector.extract_strided_slice %1 {offsets = [0, 0], sizes = [8, 1], strides = [1, 1]} : vector<8x10xf32> to vector<8x1xf32>
    %13 = vector.broadcast %12 : vector<8x1xf32> to vector<8x256xf32>
    %14 = arith.mulf %13, %8 : vector<8x256xf32>
    %15 = vector.extract_strided_slice %1 {offsets = [0, 1], sizes = [8, 1], strides = [1, 1]} : vector<8x10xf32> to vector<8x1xf32>
    %16 = vector.broadcast %15 : vector<8x1xf32> to vector<8x256xf32>
    %17 = arith.mulf %16, %0 : vector<8x256xf32>
    %18 = arith.addf %14, %17 : vector<8x256xf32>
    %19 = vector.extract_strided_slice %1 {offsets = [0, 2], sizes = [8, 1], strides = [1, 1]} : vector<8x10xf32> to vector<8x1xf32>
    %20 = vector.broadcast %19 : vector<8x1xf32> to vector<8x256xf32>
    %21 = arith.mulf %20, %11 : vector<8x256xf32>
    %22 = arith.addf %18, %21 : vector<8x256xf32>
    %23 = vector.extract_strided_slice %1 {offsets = [0, 3], sizes = [8, 1], strides = [1, 1]} : vector<8x10xf32> to vector<8x1xf32>
    %24 = vector.broadcast %23 : vector<8x1xf32> to vector<8x256xf32>
    %25 = arith.mulf %24, %8 : vector<8x256xf32>
    %26 = vector.extract_strided_slice %1 {offsets = [0, 4], sizes = [8, 1], strides = [1, 1]} : vector<8x10xf32> to vector<8x1xf32>
    %27 = vector.broadcast %26 : vector<8x1xf32> to vector<8x256xf32>
    %28 = arith.mulf %27, %0 : vector<8x256xf32>
    %29 = arith.addf %25, %28 : vector<8x256xf32>
    %30 = vector.extract_strided_slice %1 {offsets = [0, 5], sizes = [8, 1], strides = [1, 1]} : vector<8x10xf32> to vector<8x1xf32>
    %31 = vector.broadcast %30 : vector<8x1xf32> to vector<8x256xf32>
    %32 = arith.mulf %31, %11 : vector<8x256xf32>
    %33 = arith.addf %29, %32 : vector<8x256xf32>
    %34 = vector.extract_strided_slice %1 {offsets = [0, 6], sizes = [8, 1], strides = [1, 1]} : vector<8x10xf32> to vector<8x1xf32>
    %35 = vector.broadcast %34 : vector<8x1xf32> to vector<8x256xf32>
    %36 = arith.mulf %35, %8 : vector<8x256xf32>
    %37 = vector.extract_strided_slice %1 {offsets = [0, 7], sizes = [8, 1], strides = [1, 1]} : vector<8x10xf32> to vector<8x1xf32>
    %38 = vector.broadcast %37 : vector<8x1xf32> to vector<8x256xf32>
    %39 = arith.mulf %38, %0 : vector<8x256xf32>
    %40 = arith.addf %36, %39 : vector<8x256xf32>
    %41 = vector.extract_strided_slice %1 {offsets = [0, 8], sizes = [8, 1], strides = [1, 1]} : vector<8x10xf32> to vector<8x1xf32>
    %42 = vector.broadcast %41 : vector<8x1xf32> to vector<8x256xf32>
    %43 = arith.mulf %42, %11 : vector<8x256xf32>
    %44 = arith.addf %40, %43 : vector<8x256xf32>
    %45 = vector.extract_strided_slice %1 {offsets = [0, 9], sizes = [8, 1], strides = [1, 1]} : vector<8x10xf32> to vector<8x1xf32>
    %46 = vector.broadcast %45 : vector<8x1xf32> to vector<8x256xf32>
    %47 = arith.addf %46, %33 : vector<8x256xf32>
    %c16_i32 = arith.constant 16 : i32
    %48 = tpu.dynamic_rotate %22 by %c16_i32 dim 1 : vector<8x256xf32>, i32 -> vector<8x256xf32>
    %49 = vector.broadcast %4 : vector<1x256xf32> to vector<8x256xf32>
    %50 = arith.mulf %48, %49 : vector<8x256xf32>
    %51 = arith.addf %47, %50 : vector<8x256xf32>
    %c240_i32 = arith.constant 240 : i32
    %52 = tpu.dynamic_rotate %44 by %c240_i32 dim 1 : vector<8x256xf32>, i32 -> vector<8x256xf32>
    %53 = vector.broadcast %5 : vector<1x256xf32> to vector<8x256xf32>
    %54 = arith.mulf %52, %53 : vector<8x256xf32>
    %55 = arith.addf %51, %54 : vector<8x256xf32>
    %56 = arith.maximumf %0, %55 : vector<8x256xf32>
    %c0_8 = arith.constant 0 : index
    %c0_9 = arith.constant 0 : index
    %57 = vector.load %arg4[%c0_8, %c0_9] : memref<8x256xf32, #tpu.memory_space<vmem>>, vector<8x256xf32>
    tpu.vector_store %arg4[%c0_8, %c0_9], %56 {strides = array<i32>} : memref<8x256xf32, #tpu.memory_space<vmem>>, vector<8x256xf32>,
    return
  }
  func.func @transform_0(%arg0: i32) -> (i32, i32) {
    %c0_i32 = arith.constant 0 : i32
    %c0_i32_0 = arith.constant 0 : i32
    return %arg0, %c0_i32 : i32, i32
  }
  func.func @transform_1(%arg0: i32) -> (i32, i32) {
    %c0_i32 = arith.constant 0 : i32
    %c0_i32_0 = arith.constant 0 : i32
    return %arg0, %c0_i32 : i32, i32
  }
  func.func @transform_2(%arg0: i32) -> (i32, i32) {
    %c0_i32 = arith.constant 0 : i32
    %c0_i32_0 = arith.constant 0 : i32
    %c0_i32_1 = arith.constant 0 : i32
    return %c0_i32, %c0_i32_0 : i32, i32
  }
  func.func @transform_3(%arg0: i32) -> (i32, i32) {
    %c0_i32 = arith.constant 0 : i32
    %c0_i32_0 = arith.constant 0 : i32
    return %arg0, %c0_i32 : i32, i32
  }
}

</mosaic_0001>

<bundles_post_ra>
// kernel: tpu_custom_call.1
= control target key start
LH: loop header
LB: loop body
LE: loop exit
PB: predicated region body
PF: predicated region fallthrough
CT: control target
= control target key end

     0   :  { %8 = vsyncpa [#allocation3], 0  ;;  %s438_s0 = inlined_call_operand.hbm [shape: f32[8,256], index: 0, kind: input, shape index: {}]   ;;  %s439_s1 = inlined_call_operand.hbm [shape: f32[8,10], index: 1, kind: input, shape index: {}]   ;;  %s440_s2 = inlined_call_operand.hbm [shape: f32[4,256], index: 2, kind: input, shape index: {}]   ;;  %s441_s3 = inlined_call_operand.hbm [shape: f32[8,256], index: 3, kind: output, shape index: {}]  }
   0x1   :  { %9 = vsyncpa [#allocation6], 0  ;;  %s27_s14 = sshll.u32 %s439_s1, 4  ;;  %s28_s14 = int_to_ptr.hbm [resolvable:$true] %s27_s14 }
   0x2   :  { %10 = vsyncpa [#allocation4], 0  ;;  %s354_s15 = smov [#allocation5]   ;;  %s16_s19 = sshll.u32 %s438_s0, 4  ;;  %s17_s19 = int_to_ptr.hbm [resolvable:$true] %s16_s19 }
   0x3   :  { %s29_s16 = sshll.u32 %s354_s15, 4  ;;  %s355_s20 = smov [#allocation2]   ;;  %s30_s16 = int_to_ptr.vmem [resolvable:$true] %s29_s16 }
   0x4   :  { %32 = dma.hbm_to_vmem [thread:$0]  %s28_s14, 128, %s30_s16, [#allocation6]  }
   0x5   :  { %s18_s21 = sshll.u32 %s355_s20, 4  ;;  %s38_s24 = sshll.u32 %s440_s2, 4  ;;  %s19_s21 = int_to_ptr.vmem [resolvable:$true] %s18_s21  ;;  %s39_s24 = int_to_ptr.hbm [resolvable:$true] %s38_s24 }
   0x6   :  { %21 = dma.hbm_to_vmem [thread:$0]  %s17_s19, 256, %s19_s21, [#allocation3]  }
   0x7   :  { %s356_s1 = smov [#allocation7]  }
   0x8   :  { %s40_s25 = sshll.u32 %s356_s1, 4  ;;  %s41_s25 = int_to_ptr.vmem [resolvable:$true] %s40_s25 }
   0x9   :  { %43 = dma.hbm_to_vmem [thread:$0]  %s39_s24, 128, %s41_s25, [#allocation6]  }
   0xa   :  { %348 = dma.done.wait [#allocation3], 256  }
   0xb   :  { %349 = vsyncadd [#allocation3], 4294967040 }
   0xc   :  { %350 = dma.done.wait [#allocation6], 256  }
   0xd   :  { %351 = vsyncadd [#allocation6], 4294967040  ;;  %v357_v0 = vmov 0   ;;  %v358_v1 = vmov 6   ;;  %v359_v2 = vmov 2   ;;  %v401_v3 = vld [vmem:[#allocation2] sm:$0xff]  ;;  %v70_v13 = vlaneseq }
   0xe   :  { %241 = vset.pattern.permute.xlu2 %v357_v0  ;;  %244 = vset.pattern.permute.xlu1 %v358_v1  ;;  %v403_v4 = vld [vmem:[#allocation5] sm:$0xff]  ;;  %s360_s0 = smov 127   ;;  %s361_s2 = smov 1   ;;  %v408_v5 = vld [vmem:[#allocation2 + $0x8] sm:$0xff]  ;;  %v362_v6 = vmov 1   ;;  %v363_v7 = vmov 7  }
   0xf   :  { %243 = vset.pattern.permute.xlu0 %v359_v2  ;;  %82 = vrot.lane.b32.xlu1 %v401_v3, %s360_s0  ;;  %v364_v8 = vmov 8   ;;  %v365_v9 = vmov 4   ;;  %v366_v10 = vmov 3   ;;  %v367_v11 = vmov 5   ;;  %s369_s26 = smov 16   ;;  %s370_s27 = smov 112  }
  0x10   :  { %66 = vrot.lane.b32.xlu0 %v401_v3, %s361_s2  ;;  %98 = vperm.xlu2 %241, %v403_v4   ;;  %v368_v12 = vmov 9   ;;  %v420_v17 = vand.u32 127, %v70_v13  ;;  %v59_v18 = vld [vmem:[#allocation7] ss:$4 sm:$0x3]  ;;  %s371_s28 = smov [#allocation8]  }
  0x11   :  { %v76_v19 = vperm.slane %v59_v18, 0  ;;  %v77_v20 = vperm.slane %v59_v18, 1  ;;  %v61_v21 = vld [vmem:[#allocation7 + $0x1] ss:$4 sm:$0x3]  ;;  %s210_s29 = sshll.u32 %s371_s28, 4  ;;  %s211_s29 = int_to_ptr.vmem [resolvable:$true] %s210_s29 }
  0x12   :  { %vm72_vm0 = vcmp.lt.s32.totalorder %v420_v17, 1  ;;  %vm86_vm1 = vcmp.lt.s32.totalorder %v420_v17, 127  ;;  %v90_v29 = vperm.slane %v61_v21, 0  ;;  %v91_v30 = vperm.slane %v61_v21, 1  ;;  %s212_s5 = sshll.u32 %s441_s3, 4  ;;  %s213_s5 = int_to_ptr.hbm [resolvable:$true] %s212_s5 }
  0x13   :  { %vm173_vm2 = vcmp.lt.s32.totalorder %v420_v17, 16  ;;  %v65_v18 = vld [vmem:[#allocation7 + $0x3] ss:$4 sm:$0x3]  ;;  %vm189_vm3 = vcmp.lt.s32.totalorder %v420_v17, 112 }
  0x17   :  { %84 = vrot.lane.b32.xlu1 %v408_v5, %s360_s0 }
  0x18   :  { %68 = vrot.lane.b32.xlu0 %v408_v5, %s361_s2  ;;  %242 = vset.pattern.permute.xlu2 %v362_v6 }
  0x19   :  { %104 = vperm.xlu2 %242, %v403_v4  }
  0x1f   :  { %142 = vperm.xlu1 %244, %v403_v4  }
  0x20   :  { %112 = vperm.xlu0 %243, %v403_v4  }
  0x21   :  { %245 = vset.pattern.permute.xlu2 %v363_v7 }
  0x22   :  { %148 = vperm.xlu2 %245, %v403_v4  }
  0x27   :  { %246 = vset.pattern.permute.xlu1 %v364_v8 }
  0x28   :  { %248 = vset.pattern.permute.xlu0 %v365_v9  ;;  %156 = vperm.xlu1 %246, %v403_v4  }
  0x29   :  { %126 = vperm.xlu0 %248, %v403_v4  }
  0x2a   :  { %247 = vset.pattern.permute.xlu2 %v366_v10 }
  0x2b   :  { %120 = vperm.xlu2 %247, %v403_v4  }
  0x30   :  { %249 = vset.pattern.permute.xlu1 %v367_v11 }
  0x31   :  { %134 = vperm.xlu1 %249, %v403_v4   ;;  %251 = vset.pattern.permute.xlu0 %v368_v12 }
  0x33   :  { %250 = vset.pattern.permute.xlu2 %v368_v12  ;;  %v63_v12 = vld [vmem:[#allocation7 + $0x2] ss:$4 sm:$0x3] }
  0x34   :  { %v177_v13 = vperm.slane %v63_v12, 0 }
  0x6a   :  { %v99_v14 = vpop.permute.xlu2 %98 }
  0x73   :  { %v105_v26 = vpop.permute.xlu2 %104 }
  0x74   :  { %v107_v33 = vmul.f32 %v105_v26, %v401_v3  ;;  %v108_v34 = vmul.f32 %v105_v26, %v408_v5 }
  0x7c   :  { %v149_v47 = vpop.permute.xlu2 %148 }
  0x7d   :  { %v151_v48 = vmul.f32 %v149_v47, %v401_v3  ;;  %v152_v49 = vmul.f32 %v149_v47, %v408_v5 }
  0x81   :  { %v83_v15 = vpop.permute.xlu1 %82 }
  0x82   :  { %v67_v16 = vpop.permute.xlu0 %66 }
  0x85   :  { %v121_v60 = vpop.permute.xlu2 %120 }
  0x89   :  { %v85_v22 = vpop.permute.xlu1 %84 }
  0x8a   :  { %v69_v23 = vpop.permute.xlu0 %68  ;;  %v87_v31 = vsel %vm86_vm1, %v83_v15, %v85_v22  ;;  %v88_v32 = vsel %vm86_vm1, %v85_v22, %v83_v15  ;;  %v193_v22 = vperm.slane %v65_v18, 0 }
  0x8b   :  { %v73_v24 = vsel %vm72_vm0, %v67_v16, %v69_v23  ;;  %v74_v25 = vsel %vm72_vm0, %v69_v23, %v67_v16  ;;  %v94_v37 = vmul.f32 %v90_v29, %v87_v31  ;;  %v95_v38 = vmul.f32 %v91_v30, %v88_v32 }
  0x8c   :  { %v80_v27 = vmul.f32 %v76_v19, %v74_v25  ;;  %v81_v28 = vmul.f32 %v77_v20, %v73_v24  ;;  %v194_v23 = vperm.slane %v65_v18, 1 }
  0x8e   :  { %v101_v35 = vmul.f32 %v99_v14, %v80_v27  ;;  %v102_v36 = vmul.f32 %v99_v14, %v81_v28  ;;  %v123_v63 = vmul.f32 %v121_v60, %v80_v27  ;;  %v124_v0 = vmul.f32 %v121_v60, %v81_v28 }
  0x8f   :  { %v178_v14 = vperm.slane %v63_v12, 1 }
  0x90   :  { %v110_v41 = vadd.f32 %v108_v34, %v102_v36  ;;  %v109_v42 = vadd.f32 %v107_v33, %v101_v35 }
  0x91   :  { %v143_v39 = vpop.permute.xlu1 %142 }
  0x92   :  { %v113_v40 = vpop.permute.xlu0 %112  ;;  %v145_v50 = vmul.f32 %v143_v39, %v80_v27  ;;  %v146_v51 = vmul.f32 %v143_v39, %v81_v28 }
  0x93   :  { %v115_v43 = vmul.f32 %v113_v40, %v94_v37  ;;  %v116_v44 = vmul.f32 %v113_v40, %v95_v38 }
  0x94   :  { %v153_v53 = vadd.f32 %v151_v48, %v145_v50  ;;  %v154_v54 = vadd.f32 %v152_v49, %v146_v51 }
  0x95   :  { %v117_v45 = vadd.f32 %v115_v43, %v109_v42  ;;  %v118_v46 = vadd.f32 %v116_v44, %v110_v41 }
  0x97   :  { %171 = vrot.lane.b32.xlu1 %v118_v46, %s369_s26  ;;  %169 = vrot.lane.b32.xlu2 %v117_v45, %s369_s26 }
  0x9a   :  { %v157_v52 = vpop.permute.xlu1 %156 }
  0x9b   :  { %v159_v55 = vmul.f32 %v157_v52, %v94_v37  ;;  %v160_v56 = vmul.f32 %v157_v52, %v95_v38  ;;  %v127_v59 = vpop.permute.xlu0 %126 }
  0x9c   :  { %v129_v61 = vmul.f32 %v127_v59, %v401_v3  ;;  %v130_v62 = vmul.f32 %v127_v59, %v408_v5 }
  0x9d   :  { %v161_v57 = vadd.f32 %v159_v55, %v153_v53  ;;  %v162_v58 = vadd.f32 %v160_v56, %v154_v54 }
  0x9e   :  { %v131_v2 = vadd.f32 %v129_v61, %v123_v63  ;;  %v132_v6 = vadd.f32 %v130_v62, %v124_v0 }
  0x9f   :  { %164 = vperm.xlu2 %250, %v403_v4   ;;  %187 = vrot.lane.b32.xlu1 %v162_v58, %s370_s27 }
  0xa0   :  { %185 = vrot.lane.b32.xlu0 %v161_v57, %s370_s27 }
  0xa3   :  { %v135_v1 = vpop.permute.xlu1 %134 }
  0xa4   :  { %v137_v7 = vmul.f32 %v135_v1, %v94_v37  ;;  %v138_v8 = vmul.f32 %v135_v1, %v95_v38 }
  0xa6   :  { %v139_v9 = vadd.f32 %v137_v7, %v131_v2  ;;  %v140_v10 = vadd.f32 %v138_v8, %v132_v6 }
  0xf1   :  { %v170_v11 = vpop.permute.xlu2 %169 }
  0xf9   :  { %v165_v19 = vpop.permute.xlu2 %164 }
  0xfa   :  { %v167_v24 = vadd.f32 %v165_v19, %v139_v9  ;;  %v168_v25 = vadd.f32 %v165_v19, %v140_v10 }
 0x109   :  { %v172_v4 = vpop.permute.xlu1 %171 }
 0x10a   :  { %v174_v15 = vsel %vm173_vm2, %v170_v11, %v172_v4  ;;  %v175_v16 = vsel %vm173_vm2, %v172_v4, %v170_v11 }
 0x10b   :  { %v181_v20 = vmul.f32 %v177_v13, %v175_v16  ;;  %v182_v21 = vmul.f32 %v178_v14, %v174_v15 }
 0x10d   :  { %v183_v30 = vadd.f32 %v181_v20, %v167_v24  ;;  %v184_v31 = vadd.f32 %v182_v21, %v168_v25 }
 0x111   :  { %v188_v26 = vpop.permute.xlu1 %187 }
 0x112   :  { %v186_v27 = vpop.permute.xlu0 %185 }
 0x113   :  { %v190_v28 = vsel %vm189_vm3, %v186_v27, %v188_v26  ;;  %v191_v29 = vsel %vm189_vm3, %v188_v26, %v186_v27 }
 0x114   :  { %v197_v32 = vmul.f32 %v193_v22, %v190_v28  ;;  %v198_v33 = vmul.f32 %v194_v23, %v191_v29 }
 0x116   :  { %v199_v34 = vadd.f32 %v197_v32, %v183_v30  ;;  %v200_v35 = vadd.f32 %v198_v33, %v184_v31 }
 0x118   :  { %v201_v17 = vmax.f32 %v401_v3, %v199_v34  ;;  %v202_v36 = vmax.f32 %v408_v5, %v200_v35 }
 0x11a   :  { %203 = vst [vmem:[#allocation8] sm:$0xff] %v201_v17 }
 0x11b   :  { %204 = vst [vmem:[#allocation8 + $0x8] sm:$0xff] %v202_v36 }
 0x11c   :  { %215 = dma.vmem_to_hbm [thread:$0]  %s211_s29, 256, %s213_s5, [#allocation4]  }
 0x11d   :  { %352 = dma.done.wait [#allocation4], 256  }
 0x11e   :  { %353 = vsyncadd [#allocation4], 4294967040 }
 0x11f   :  { %220 = vsyncpa [#allocation3], 1 }
 0x120   :  { %221 = vsyncpa [#allocation6], 1 }
 0x121   :  { %222 = vsyncpa [#allocation4], 1 }

</bundles_post_ra>
